<compile_context>
chip_gen: v7x
topology: tpu7x:2x2x1
jax: 0.10.0
libtpu: 0.0.40
codegen_flags: <defaults>
</compile_context>

<pallas_src>
import jax
import jax.numpy as jnp
from jax.experimental import pallas as pl
from jax.experimental.pallas import tpu as pltpu

_LANES = 128


def _dice_partials_kernel(x_ref, t_ref, acc_ref):
    """One grid step = one (sample, spatial-chunk, spatial-tile).

    x_ref:   (1, C, R, 128)  logits tile (native dtype)
    t_ref:   (1, 1, R, 128)  class indices (int8 or int32)
    acc_ref: (1, 3, 8, 128)  f32 output block; its index_map is constant over
             the innermost grid axis, so it stays resident in VMEM and acts
             as the accumulator: [0]=intersection, [1]=sum(p[:,1:]),
             [2]=#foreground pixels.

    NOTE: correctness relies on the innermost grid axis being the spatial
    reduction axis (accumulator reset at s == 0, block written back when the
    (sample, chunk) output block index changes).
    """
    s = pl.program_id(2)

    @pl.when(s == 0)
    def _():
        acc_ref[...] = jnp.zeros_like(acc_ref)

    C = x_ref.shape[1]
    R = x_ref.shape[2]

    t = t_ref[0, 0].astype(jnp.int32)                        # (R, 128)

    # Channel axis is a leading (non-layout) dim -> dense element-wise VPU ops.
    m = x_ref[0, 0].astype(jnp.float32)
    for c in range(1, C):
        m = jnp.maximum(m, x_ref[0, c].astype(jnp.float32))

    e0 = jnp.exp(x_ref[0, 0].astype(jnp.float32) - m)        # background exp
    sum_e = e0
    e_sel = jnp.zeros_like(e0)                                # exp at target class (c >= 1)
    for c in range(1, C):
        ec = jnp.exp(x_ref[0, c].astype(jnp.float32) - m)
        sum_e = sum_e + ec
        e_sel = e_sel + jnp.where(t == c, ec, 0.0)

    inv = 1.0 / sum_e                  # exact divide: bit-parity with reference
    inter_p = e_sel * inv              # softmax prob of the target class (fg only)
    sin_p = (sum_e - e0) * inv         # sum of softmax probs over classes >= 1
    fg = (t >= 1) & (t < C)            # out-of-range labels contribute nothing
    stg_p = fg.astype(jnp.float32)

    def fold(v):                       # (R, 128) -> (8, 128): slab sums (VPU adds)
        return jnp.sum(v.reshape(R // 8, 8, _LANES), axis=0)

    acc_ref[0, 0] = acc_ref[0, 0] + fold(inter_p)
    acc_ref[0, 1] = acc_ref[0, 1] + fold(sin_p)
    acc_ref[0, 2] = acc_ref[0, 2] + fold(stg_p)


def _pick_rows_tile(n_rows, bytes_per_row, step, cap_bytes):
    """Largest multiple-of-`step` divisor of n_rows whose logits block stays
    under cap_bytes (floor = step, so the cap is always enforced)."""
    cap_rows = max(step, cap_bytes // max(bytes_per_row, 1))
    best = step
    r = step
    while r <= min(n_rows, cap_rows):
        if n_rows % r == 0:
            best = r
        r += step
    return best


def dice_loss_pallas(logits, target, smooth=1e-05, *,
                     max_block_bytes=4 * 1024 * 1024):
    """Pallas implementation of dice_loss(input, target, smooth, 'mean')."""
    N, C, H, W = logits.shape
    assert target.shape == (N, H, W)
    HW = H * W

    # --- lane-dense spatial layout: (N, C, n_rows, 128) ----------------------
    pix_align = 8 * _LANES
    HW_pad = ((HW + pix_align - 1) // pix_align) * pix_align
    pad = HW_pad - HW

    x = logits.reshape(N, C, HW)
    t = target.reshape(N, HW)
    if pad:
        # Padded pixels: logits (0, -1e30, ...) -> softmax mass entirely on the
        # (dropped) background channel; target 0 -> zero contribution to sums.
        pad_x = jnp.full((N, C, pad), -1e30, dtype=logits.dtype)
        pad_x = pad_x.at[:, 0, :].set(0)
        x = jnp.concatenate([x, pad_x], axis=2)
        t = jnp.concatenate([t, jnp.zeros((N, pad), dtype=t.dtype)], axis=1)

    n_rows = HW_pad // _LANES                     # multiple of 8
    x = x.reshape(N, C, n_rows, _LANES)

    # int8 targets: ~4x less target HBM traffic; only when the row tiling can
    # honor int8's native (32, 128) VMEM tile.
    use_int8 = (C <= 127) and (n_rows % 32 == 0)
    t_dtype = jnp.int8 if use_int8 else jnp.int32
    t = t.astype(t_dtype).reshape(N, 1, n_rows, _LANES)

    # --- tiling ---------------------------------------------------------------
    row_step = 32 if use_int8 else 8
    bytes_per_row = C * _LANES * logits.dtype.itemsize
    rows_tile = _pick_rows_tile(n_rows, bytes_per_row, row_step, max_block_bytes)
    n_tiles = n_rows // rows_tile

    # Megacore (v7x): if the batch alone cannot fill 2 TensorCores, split the
    # spatial axis into 2 "parallel" chunks; partials are combined below.
    n_chunks = 2 if (N < 2 and n_tiles % 2 == 0) else 1
    tiles_per_chunk = n_tiles // n_chunks

    partials = pl.pallas_call(
        _dice_partials_kernel,
        out_shape=jax.ShapeDtypeStruct((N, 3 * n_chunks, 8, _LANES), jnp.float32),
        grid_spec=pltpu.PrefetchScalarGridSpec(
            num_scalar_prefetch=0,
            grid=(N, n_chunks, tiles_per_chunk),
            in_specs=[
                pl.BlockSpec((1, C, rows_tile, _LANES),
                             lambda i, c, s: (i, 0, c * tiles_per_chunk + s, 0)),
                pl.BlockSpec((1, 1, rows_tile, _LANES),
                             lambda i, c, s: (i, 0, c * tiles_per_chunk + s, 0)),
            ],
            out_specs=pl.BlockSpec((1, 3, 8, _LANES),
                                   lambda i, c, s: (i, c, 0, 0)),
        ),
        compiler_params=pltpu.CompilerParams(
            dimension_semantics=("parallel", "parallel", "arbitrary"),
            vmem_limit_bytes=32 * 1024 * 1024,
        ),
    )(x, t)

    # Final cross-lane collapse + dice ratio with exact arithmetic (wrapper).
    sums = partials.reshape(N, n_chunks, 3, 8 * _LANES).sum(axis=(1, 3))  # (N, 3)
    inter, s_in, s_tg = sums[:, 0], sums[:, 1], sums[:, 2]
    dice = 2.0 * (inter + smooth) / (s_in + s_tg + smooth)
    return 1.0 - jnp.mean(dice)                   # reduction='mean'


def dice_loss_ref(logits, target, smooth=1e-05):
    """Pure-JAX reference mirroring the PyTorch code (reduction='mean')."""
    N, C, H, W = logits.shape
    oh = jax.nn.one_hot(target, C, dtype=jnp.float32)           # (N, H, W, C)
    oh = jnp.transpose(oh, (0, 3, 1, 2))[:, 1:]                  # (N, C-1, H, W)
    p = jax.nn.softmax(logits.astype(jnp.float32), axis=1)[:, 1:]
    p_flat = p.reshape(N, -1)
    t_flat = oh.reshape(N, -1)
    inter = jnp.sum(p_flat * t_flat, axis=1)
    dice = 2.0 * (inter + smooth) / (p_flat.sum(1) + t_flat.sum(1) + smooth)
    return 1.0 - dice.mean()


if __name__ == "__main__":
    key = jax.random.PRNGKey(0)
    k1, k2 = jax.random.split(key)

    N, C, H, W = 2, 4, 16, 16
    logits = jax.random.normal(k1, (N, C, H, W), dtype=jnp.float32)
    target = jax.random.randint(k2, (N, H, W), 0, C, dtype=jnp.int32)

    loss = jax.block_until_ready(dice_loss_pallas(logits, target))
    ref = jax.block_until_ready(dice_loss_ref(logits, target))

    # Exact softmax divide + exact wrapper-side dice: tight tolerance again.
    assert jnp.allclose(loss, ref, rtol=1e-4, atol=1e-5), (loss, ref)

    print("KERNEL_OK")
</pallas_src>

<mosaic_0001>
module attributes {stable_mosaic.version = 11 : i64} {
  func.func @_dice_partials_kernel(%arg0: i32, %arg1: i32, %arg2: i32, %arg3: memref<1x4x8x128xf32, #tpu.memory_space<vmem>>, %arg4: memref<1x1x8x128xi32, #tpu.memory_space<vmem>>, %arg5: memref<1x3x8x128xf32, #tpu.memory_space<vmem>>) attributes {dimension_semantics = [#tpu.dimension_semantics<parallel>, #tpu.dimension_semantics<parallel>, #tpu.dimension_semantics<arbitrary>], iteration_bounds = array<i64: 2, 1, 1>, scalar_prefetch = 0 : i64, scratch_operands = 0 : i64, tpu.core_type = #tpu.core_type<tc>, window_params = [{transform_indices = @transform_0, window_bounds = array<i64: 1, 4, 8, 128>}, {transform_indices = @transform_1, window_bounds = array<i64: 1, 1, 8, 128>}, {transform_indices = @transform_2, window_bounds = array<i64: 1, 3, 8, 128>}]} {
    %c0_i32 = arith.constant 0 : i32
    %0 = arith.cmpi eq, %arg2, %c0_i32 : i32
    %1 = arith.extui %0 : i1 to i32
    %c0_i32_0 = arith.constant 0 : i32
    %2 = arith.cmpi ne, %1, %c0_i32_0 : i32
    scf.if %2 {
      %cst_65 = arith.constant 0.000000e+00 : f32
      %87 = vector.broadcast %cst_65 : f32 to vector<1x3x8x128xf32>
      %c0_66 = arith.constant 0 : index
      %c0_67 = arith.constant 0 : index
      %c0_68 = arith.constant 0 : index
      %c0_69 = arith.constant 0 : index
      %88 = vector.load %arg5[%c0_66, %c0_67, %c0_68, %c0_69] : memref<1x3x8x128xf32, #tpu.memory_space<vmem>>, vector<1x3x8x128xf32>
      tpu.vector_store %arg5[%c0_66, %c0_67, %c0_68, %c0_69], %87 {strides = array<i32>} : memref<1x3x8x128xf32, #tpu.memory_space<vmem>>, vector<1x3x8x128xf32>,
    } else {
    }
    %c0 = arith.constant 0 : index
    %c0_1 = arith.constant 0 : index
    %c0_2 = arith.constant 0 : index
    %c0_3 = arith.constant 0 : index
    %3 = vector.load %arg4[%c0, %c0_1, %c0_2, %c0_3] : memref<1x1x8x128xi32, #tpu.memory_space<vmem>>, vector<1x1x8x128xi32>
    %4 = vector.shape_cast %3 : vector<1x1x8x128xi32> to vector<8x128xi32>
    %c0_4 = arith.constant 0 : index
    %c0_5 = arith.constant 0 : index
    %c0_6 = arith.constant 0 : index
    %c0_7 = arith.constant 0 : index
    %5 = vector.load %arg3[%c0_4, %c0_5, %c0_6, %c0_7] : memref<1x4x8x128xf32, #tpu.memory_space<vmem>>, vector<1x1x8x128xf32>
    %6 = vector.shape_cast %5 : vector<1x1x8x128xf32> to vector<8x128xf32>
    %c0_8 = arith.constant 0 : index
    %c1 = arith.constant 1 : index
    %c0_9 = arith.constant 0 : index
    %c0_10 = arith.constant 0 : index
    %7 = vector.load %arg3[%c0_8, %c1, %c0_9, %c0_10] : memref<1x4x8x128xf32, #tpu.memory_space<vmem>>, vector<1x1x8x128xf32>
    %8 = vector.shape_cast %7 : vector<1x1x8x128xf32> to vector<8x128xf32>
    %9 = arith.maximumf %6, %8 : vector<8x128xf32>
    %c0_11 = arith.constant 0 : index
    %c2 = arith.constant 2 : index
    %c0_12 = arith.constant 0 : index
    %c0_13 = arith.constant 0 : index
    %10 = vector.load %arg3[%c0_11, %c2, %c0_12, %c0_13] : memref<1x4x8x128xf32, #tpu.memory_space<vmem>>, vector<1x1x8x128xf32>
    %11 = vector.shape_cast %10 : vector<1x1x8x128xf32> to vector<8x128xf32>
    %12 = arith.maximumf %9, %11 : vector<8x128xf32>
    %c0_14 = arith.constant 0 : index
    %c3 = arith.constant 3 : index
    %c0_15 = arith.constant 0 : index
    %c0_16 = arith.constant 0 : index
    %13 = vector.load %arg3[%c0_14, %c3, %c0_15, %c0_16] : memref<1x4x8x128xf32, #tpu.memory_space<vmem>>, vector<1x1x8x128xf32>
    %14 = vector.shape_cast %13 : vector<1x1x8x128xf32> to vector<8x128xf32>
    %15 = arith.maximumf %12, %14 : vector<8x128xf32>
    %c0_17 = arith.constant 0 : index
    %c0_18 = arith.constant 0 : index
    %c0_19 = arith.constant 0 : index
    %c0_20 = arith.constant 0 : index
    %16 = vector.load %arg3[%c0_17, %c0_18, %c0_19, %c0_20] : memref<1x4x8x128xf32, #tpu.memory_space<vmem>>, vector<1x1x8x128xf32>
    %17 = vector.shape_cast %16 : vector<1x1x8x128xf32> to vector<8x128xf32>
    %18 = arith.subf %17, %15 : vector<8x128xf32>
    %19 = math.exp %18 : vector<8x128xf32>
    %cst = arith.constant 0.000000e+00 : f32
    %20 = vector.broadcast %cst : f32 to vector<8x128xf32>
    %c0_21 = arith.constant 0 : index
    %c1_22 = arith.constant 1 : index
    %c0_23 = arith.constant 0 : index
    %c0_24 = arith.constant 0 : index
    %21 = vector.load %arg3[%c0_21, %c1_22, %c0_23, %c0_24] : memref<1x4x8x128xf32, #tpu.memory_space<vmem>>, vector<1x1x8x128xf32>
    %22 = vector.shape_cast %21 : vector<1x1x8x128xf32> to vector<8x128xf32>
    %23 = arith.subf %22, %15 : vector<8x128xf32>
    %24 = math.exp %23 : vector<8x128xf32>
    %25 = arith.addf %19, %24 : vector<8x128xf32>
    %c1_i32 = arith.constant 1 : i32
    %26 = vector.broadcast %c1_i32 : i32 to vector<8x128xi32>
    %27 = arith.cmpi eq, %4, %26 : vector<8x128xi32>
    %cst_25 = arith.constant 0.000000e+00 : f32
    %28 = vector.broadcast %cst_25 : f32 to vector<8x128xf32>
    %29 = arith.select %27, %24, %28 : vector<8x128xi1>, vector<8x128xf32>
    %30 = arith.addf %20, %29 : vector<8x128xf32>
    %c0_26 = arith.constant 0 : index
    %c2_27 = arith.constant 2 : index
    %c0_28 = arith.constant 0 : index
    %c0_29 = arith.constant 0 : index
    %31 = vector.load %arg3[%c0_26, %c2_27, %c0_28, %c0_29] : memref<1x4x8x128xf32, #tpu.memory_space<vmem>>, vector<1x1x8x128xf32>
    %32 = vector.shape_cast %31 : vector<1x1x8x128xf32> to vector<8x128xf32>
    %33 = arith.subf %32, %15 : vector<8x128xf32>
    %34 = math.exp %33 : vector<8x128xf32>
    %35 = arith.addf %25, %34 : vector<8x128xf32>
    %c2_i32 = arith.constant 2 : i32
    %36 = vector.broadcast %c2_i32 : i32 to vector<8x128xi32>
    %37 = arith.cmpi eq, %4, %36 : vector<8x128xi32>
    %cst_30 = arith.constant 0.000000e+00 : f32
    %38 = vector.broadcast %cst_30 : f32 to vector<8x128xf32>
    %39 = arith.select %37, %34, %38 : vector<8x128xi1>, vector<8x128xf32>
    %40 = arith.addf %30, %39 : vector<8x128xf32>
    %c0_31 = arith.constant 0 : index
    %c3_32 = arith.constant 3 : index
    %c0_33 = arith.constant 0 : index
    %c0_34 = arith.constant 0 : index
    %41 = vector.load %arg3[%c0_31, %c3_32, %c0_33, %c0_34] : memref<1x4x8x128xf32, #tpu.memory_space<vmem>>, vector<1x1x8x128xf32>
    %42 = vector.shape_cast %41 : vector<1x1x8x128xf32> to vector<8x128xf32>
    %43 = arith.subf %42, %15 : vector<8x128xf32>
    %44 = math.exp %43 : vector<8x128xf32>
    %45 = arith.addf %35, %44 : vector<8x128xf32>
    %c3_i32 = arith.constant 3 : i32
    %46 = vector.broadcast %c3_i32 : i32 to vector<8x128xi32>
    %47 = arith.cmpi eq, %4, %46 : vector<8x128xi32>
    %cst_35 = arith.constant 0.000000e+00 : f32
    %48 = vector.broadcast %cst_35 : f32 to vector<8x128xf32>
    %49 = arith.select %47, %44, %48 : vector<8x128xi1>, vector<8x128xf32>
    %50 = arith.addf %40, %49 : vector<8x128xf32>
    %cst_36 = arith.constant 1.000000e+00 : f32
    %51 = vector.broadcast %cst_36 : f32 to vector<8x128xf32>
    %52 = arith.divf %51, %45 : vector<8x128xf32>
    %53 = arith.mulf %50, %52 : vector<8x128xf32>
    %54 = arith.subf %45, %19 : vector<8x128xf32>
    %55 = arith.mulf %54, %52 : vector<8x128xf32>
    %c1_i32_37 = arith.constant 1 : i32
    %56 = vector.broadcast %c1_i32_37 : i32 to vector<8x128xi32>
    %57 = arith.cmpi sge, %4, %56 : vector<8x128xi32>
    %c4_i32 = arith.constant 4 : i32
    %58 = vector.broadcast %c4_i32 : i32 to vector<8x128xi32>
    %59 = arith.cmpi slt, %4, %58 : vector<8x128xi32>
    %60 = arith.andi %57, %59 : vector<8x128xi1>
    %61 = arith.extui %60 : vector<8x128xi1> to vector<8x128xi32>
    %62 = arith.sitofp %61 : vector<8x128xi32> to vector<8x128xf32>
    %c0_38 = arith.constant 0 : index
    %c0_39 = arith.constant 0 : index
    %c0_40 = arith.constant 0 : index
    %c0_41 = arith.constant 0 : index
    %63 = vector.load %arg5[%c0_38, %c0_39, %c0_40, %c0_41] : memref<1x3x8x128xf32, #tpu.memory_space<vmem>>, vector<1x1x8x128xf32>
    %64 = vector.shape_cast %63 : vector<1x1x8x128xf32> to vector<8x128xf32>
    %65 = vector.shape_cast %53 : vector<8x128xf32> to vector<1x8x128xf32>
    %cst_42 = arith.constant dense<0.000000e+00> : vector<8x128xf32>
    %66 = vector.multi_reduction <add>, %65, %cst_42 [0] : vector<1x8x128xf32> to vector<8x128xf32>
    %67 = arith.addf %64, %66 : vector<8x128xf32>
    %c0_43 = arith.constant 0 : index
    %c0_44 = arith.constant 0 : index
    %c0_45 = arith.constant 0 : index
    %c0_46 = arith.constant 0 : index
    %68 = vector.load %arg5[%c0_43, %c0_44, %c0_45, %c0_46] : memref<1x3x8x128xf32, #tpu.memory_space<vmem>>, vector<1x1x8x128xf32>
    %69 = vector.shape_cast %68 : vector<1x1x8x128xf32> to vector<8x128xf32>
    %70 = vector.shape_cast %67 : vector<8x128xf32> to vector<1x1x8x128xf32>
    tpu.vector_store %arg5[%c0_43, %c0_44, %c0_45, %c0_46], %70 {strides = array<i32>} : memref<1x3x8x128xf32, #tpu.memory_space<vmem>>, vector<1x1x8x128xf32>,
    %c0_47 = arith.constant 0 : index
    %c1_48 = arith.constant 1 : index
    %c0_49 = arith.constant 0 : index
    %c0_50 = arith.constant 0 : index
    %71 = vector.load %arg5[%c0_47, %c1_48, %c0_49, %c0_50] : memref<1x3x8x128xf32, #tpu.memory_space<vmem>>, vector<1x1x8x128xf32>
    %72 = vector.shape_cast %71 : vector<1x1x8x128xf32> to vector<8x128xf32>
    %73 = vector.shape_cast %55 : vector<8x128xf32> to vector<1x8x128xf32>
    %cst_51 = arith.constant dense<0.000000e+00> : vector<8x128xf32>
    %74 = vector.multi_reduction <add>, %73, %cst_51 [0] : vector<1x8x128xf32> to vector<8x128xf32>
    %75 = arith.addf %72, %74 : vector<8x128xf32>
    %c0_52 = arith.constant 0 : index
    %c1_53 = arith.constant 1 : index
    %c0_54 = arith.constant 0 : index
    %c0_55 = arith.constant 0 : index
    %76 = vector.load %arg5[%c0_52, %c1_53, %c0_54, %c0_55] : memref<1x3x8x128xf32, #tpu.memory_space<vmem>>, vector<1x1x8x128xf32>
    %77 = vector.shape_cast %76 : vector<1x1x8x128xf32> to vector<8x128xf32>
    %78 = vector.shape_cast %75 : vector<8x128xf32> to vector<1x1x8x128xf32>
    tpu.vector_store %arg5[%c0_52, %c1_53, %c0_54, %c0_55], %78 {strides = array<i32>} : memref<1x3x8x128xf32, #tpu.memory_space<vmem>>, vector<1x1x8x128xf32>,
    %c0_56 = arith.constant 0 : index
    %c2_57 = arith.constant 2 : index
    %c0_58 = arith.constant 0 : index
    %c0_59 = arith.constant 0 : index
    %79 = vector.load %arg5[%c0_56, %c2_57, %c0_58, %c0_59] : memref<1x3x8x128xf32, #tpu.memory_space<vmem>>, vector<1x1x8x128xf32>
    %80 = vector.shape_cast %79 : vector<1x1x8x128xf32> to vector<8x128xf32>
    %81 = vector.shape_cast %62 : vector<8x128xf32> to vector<1x8x128xf32>
    %cst_60 = arith.constant dense<0.000000e+00> : vector<8x128xf32>
    %82 = vector.multi_reduction <add>, %81, %cst_60 [0] : vector<1x8x128xf32> to vector<8x128xf32>
    %83 = arith.addf %80, %82 : vector<8x128xf32>
    %c0_61 = arith.constant 0 : index
    %c2_62 = arith.constant 2 : index
    %c0_63 = arith.constant 0 : index
    %c0_64 = arith.constant 0 : index
    %84 = vector.load %arg5[%c0_61, %c2_62, %c0_63, %c0_64] : memref<1x3x8x128xf32, #tpu.memory_space<vmem>>, vector<1x1x8x128xf32>
    %85 = vector.shape_cast %84 : vector<1x1x8x128xf32> to vector<8x128xf32>
    %86 = vector.shape_cast %83 : vector<8x128xf32> to vector<1x1x8x128xf32>
    tpu.vector_store %arg5[%c0_61, %c2_62, %c0_63, %c0_64], %86 {strides = array<i32>} : memref<1x3x8x128xf32, #tpu.memory_space<vmem>>, vector<1x1x8x128xf32>,
    return
  }
  func.func @transform_0(%arg0: i32, %arg1: i32, %arg2: i32) -> (i32, i32, i32, i32) {
    %c1_i32 = arith.constant 1 : i32
    %0 = arith.muli %arg1, %c1_i32 : i32
    %1 = arith.addi %0, %arg2 : i32
    %c0_i32 = arith.constant 0 : i32
    %c0_i32_0 = arith.constant 0 : i32
    %c0_i32_1 = arith.constant 0 : i32
    return %arg0, %c0_i32, %1, %c0_i32_0 : i32, i32, i32, i32
  }
  func.func @transform_1(%arg0: i32, %arg1: i32, %arg2: i32) -> (i32, i32, i32, i32) {
    %c1_i32 = arith.constant 1 : i32
    %0 = arith.muli %arg1, %c1_i32 : i32
    %1 = arith.addi %0, %arg2 : i32
    %c0_i32 = arith.constant 0 : i32
    %c0_i32_0 = arith.constant 0 : i32
    %c0_i32_1 = arith.constant 0 : i32
    return %arg0, %c0_i32, %1, %c0_i32_0 : i32, i32, i32, i32
  }
  func.func @transform_2(%arg0: i32, %arg1: i32, %arg2: i32) -> (i32, i32, i32, i32) {
    %c0_i32 = arith.constant 0 : i32
    %c0_i32_0 = arith.constant 0 : i32
    %c0_i32_1 = arith.constant 0 : i32
    return %arg0, %arg1, %c0_i32, %c0_i32_0 : i32, i32, i32, i32
  }
}

</mosaic_0001>

<bundles_post_ra>
// kernel: tpu_custom_call.1
= control target key start
LH: loop header
LB: loop body
LE: loop exit
PB: predicated region body
PF: predicated region fallthrough
CT: control target
= control target key end

     0   :  { %7 = vsyncpa [#allocation3], 0  ;;  %s935_s0 = inlined_call_operand.hbm [shape: f32[2,4,8,128], index: 0, kind: input, shape index: {}]   ;;  %s936_s1 = inlined_call_operand.hbm [shape: s32[2,1,8,128], index: 1, kind: input, shape index: {}]   ;;  %s937_s2 = inlined_call_operand.hbm [shape: f32[2,3,8,128], index: 2, kind: output, shape index: {}]  }
   0x1   :  { %9 = vsyncpa [#allocation3 + $0x1], 0 }
   0x2   :  { %10 = vsyncpa [#allocation6], 0 }
   0x3   :  { %12 = vsyncpa [#allocation6 + $0x1], 0 }
   0x4   :  { %13 = vsyncpa [#allocation4], 0 }
   0x5   :  { %15 = vsyncpa [#allocation4 + $0x1], 0  ;;  %s711_s9 = smov 0   ;;  %s713_s10 = smov 0  }
   0x6   :  { %s715_s11 = smov 0   ;;  %s717_s12 = smov 0  }
   0x7   :  { %s719_s13 = smov 0   ;;  %s721_s14 = smov 0  }
   0x8 LB: > { %s432_s15 = sadd.s32 4294967295, %s686_s14   ;;  %s433_s16 = sadd.s32 4294967294, %s686_s14   ;;  %s686_s14 = sphi %s721_s14, %s21_s14   ;;  %s682_s13 = sphi %s719_s13, %s956_s13   ;;  %s678_s12 = sphi %s717_s12, %s955_s12   ;;  %s674_s11 = sphi %s715_s11, %s954_s11   ;;  %s670_s10 = sphi %s713_s10, %s953_s10   ;;  %s666_s9 = sphi %s711_s9, %s952_s9  }
   0x9   : > { %s40_s17 = sadd.s32 1, %s682_s13  ;;  %s51_s18 = sadd.s32 1, %s674_s11 }
   0xa   : > { %p42_p0 = scmp.ge.s32.totalorder %s40_s17, 2  ;;  %p58_p1 = scmp.ne.s32.totalorder %s674_s11, %s670_s10 }
   0xb   : > { %p59_p2 = scmp.eq.s32.totalorder %s686_s14, 0  ;;  %p64_p3 = scmp.ne.s32.totalorder %s670_s10, %s666_s9 }
   0xc   : > { %s958_s17 = smov (%p42_p0, %s40_s17), 0  ;;  %p65_p5 = scmp.eq.s32.totalorder %s432_s15, 0 }
   0xd   : > { %p752_p4 = por %p59_p2, %p58_p1  ;;  %s46_s20 = ssub.s32 %s682_s13, %s958_s17 }
   0xe   : > { %p120_p6 = scmp.eq.s32.totalorder %s432_s15, 1  ;;  %p49_p7 = scmp.eq.s32.totalorder %s46_s20, 0 }
   0xf   : > { %p758_p8 = por %p65_p5, %p64_p3  ;;  %p126_p10 = scmp.eq.s32.totalorder %s433_s16, 1 }
  0x10   : > { %p762_p9 = por %p120_p6, %p58_p1  ;;  %p475_p13 = scmp.lt.s32.totalorder %s686_s14, 2 }
  0x11   : > { %s941_s21 = scalar_select %p758_p8, 1, 0 }
  0x12   : > { %s942_s22 = scalar_select %p762_p9, 1, 0 }
  0x13   : > { %s767_s23 = scalar_select %p49_p7, %s674_s11, %s51_s18  }
  0x14   : > { %p769_p11 = por %p126_p10, %p64_p3  ;;  %s776_s25 = sand.u32 1, %s674_s11  }
  0x15   : > { %s436_s26 = sshll.u32 %s776_s25, 5  ;;  %s455_s27 = sshll.u32 %s682_s13, 9 }
  0x16   : > { %s943_s24 = scalar_select %p769_p11, 1, 0 }
  0x17   : > { %s783_s30 = scalar_lea.hbm %s935_s0, %s455_s27  ;;  %s150_s3 = scalar_lea.vmem [#allocation2], %s436_s26 }
  0x18   : > { %s159_s4 = sshll.u32 %s150_s3, 4  ;;  %p789_p0 = pnand %p475_p13, %p752_p4  ;;  %s785_s4 = int_to_ptr.vmem [resolvable:$true] %s159_s4 }
  0x19   : > { %s147_s6 = scalar_lea.sflag [#allocation3], %s776_s25  ;;  %s540_s7 = scalar_lea.hbm %s783_s30, 512 }
  0x1a   : > { %p541_p2 = scmp.ne.s32.totalorder %s783_s30, %s540_s7  ;;  %p542_p3 = pneg %p789_p0 }
  0x1b   : > { %s545_s16 = scalar_lea.hbm %s935_s0, 1024  ;;  %p546_p4 = scmp.lt.u32.totalorder %s783_s30, %s935_s0 }
  0x1c   : > { %p543_p5 = pnand %p542_p3, %p541_p2  ;;  %p547_p7 = scmp.lt.u32.totalorder %s545_s16, %s540_s7 }
  0x1d   : > { %p549_p13 = scmp.lt.u32.totalorder %s540_s7, %s783_s30 }
  0x1e   : > { %p544_p6 = pneg %p543_p5  ;;  %p548_p10 = por %p547_p7, %p546_p4 }
  0x20   : > { %p550_p12 = por %p549_p13, %p548_p10 }
  0x22   : > { %p551_p1 = pnand %p550_p12, %p544_p6 }
  0x24   : > { %554 = shalt.err (!%p551_p1)
}
  0x25   : > { %s555_s20 = scalar_lea.vmem %s785_s4, 512  ;;  %s688_s26 = smov [#allocation2]  }
  0x26   : > { %p556_p2 = scmp.ne.s32.totalorder %s785_s4, %s555_s20  ;;  %s560_s27 = sshll.u32 %s688_s26, 4  ;;  %s561_s27 = int_to_ptr.vmem [resolvable:$false] %s560_s27 }
  0x27   : > { %s562_s28 = scalar_lea.vmem %s561_s27, 1024  ;;  %p563_p9 = scmp.lt.s32.totalorder %s785_s4, %s561_s27 }
  0x28   : > { %p558_p5 = pnand %p556_p2, %p542_p3  ;;  %p564_p4 = scmp.lt.s32.totalorder %s562_s28, %s555_s20 }
  0x2a   : > { %p559_p11 = pneg %p558_p5  ;;  %p565_p7 = por %p564_p4, %p563_p9 }
  0x2c   : > { %p566_p10 = pnand %p565_p7, %p559_p11 }
  0x2e   : > { %569 = shalt.err (!%p566_p10)
}
  0x2f   : > { %s689_s29 = smov 128   ;;  %s690_s3 = smov 8  }
  0x30   : > { %467 = dma.hbm_to_vmem [thread:$0]  (!%p789_p0), %s783_s30, 512, %s785_s4, %s147_s6, %s689_s29, %s689_s29, %s690_s3  }
  0x31   : > { %p187_p12 = scmp.lt.s32.totalorder %s686_s14, 3  ;;  %s439_s7 = sshll.u32 %s776_s25, 3 }
  0x32   : > { %s440_s8 = sshll.u32 %s682_s13, 7  ;;  %p945_p9 = scmp.ge.s32.totalorder %s686_s14, 1 }
  0x33   : > { %s834_s19 = scalar_lea.hbm %s936_s1, %s440_s8  ;;  %s173_s20 = scalar_lea.vmem [#allocation5], %s439_s7 }
  0x34   : > { %p827_p11 = pnand %p945_p9, %p187_p12  ;;  %s182_s26 = sshll.u32 %s173_s20, 4  ;;  %s183_s26 = int_to_ptr.vmem [resolvable:$true] %s182_s26 }
  0x35   : > { %s170_s30 = scalar_lea.sflag [#allocation6], %s776_s25  ;;  %s570_s4 = scalar_lea.hbm %s834_s19, 128 }
  0x36   : > { %s946_s15 = scalar_select %p827_p11, 1, 0 }
  0x37   : > { %p571_p1 = scmp.ne.s32.totalorder %s834_s19, %s570_s4  ;;  %s575_s28 = scalar_lea.hbm %s936_s1, 256 }
  0x38   : > { %p576_p2 = scmp.lt.u32.totalorder %s834_s19, %s936_s1  ;;  %p577_p5 = scmp.lt.u32.totalorder %s575_s28, %s570_s4 }
  0x39   : > { %p573_p6 = pnand %p571_p1, %p542_p3  ;;  %p579_p7 = scmp.lt.u32.totalorder %s570_s4, %s834_s19 }
  0x3a   : > { %p578_p4 = por %p577_p5, %p576_p2 }
  0x3b   : > { %p574_p13 = pneg %p573_p6 }
  0x3c   : > { %p580_p10 = por %p579_p7, %p578_p4 }
  0x3e   : > { %p581_p12 = pnand %p580_p10, %p574_p13 }
  0x40   : > { %584 = shalt.err (!%p581_p12)
}
  0x41   : > { %s585_s25 = scalar_lea.vmem %s183_s26, 128  ;;  %s691_s7 = smov [#allocation5]  }
  0x42   : > { %p586_p9 = scmp.ne.s32.totalorder %s183_s26, %s585_s25  ;;  %s590_s8 = sshll.u32 %s691_s7, 4  ;;  %s591_s8 = int_to_ptr.vmem [resolvable:$false] %s590_s8 }
  0x43   : > { %s592_s16 = scalar_lea.vmem %s591_s8, 256  ;;  %p593_p8 = scmp.lt.s32.totalorder %s183_s26, %s591_s8 }
  0x44   : > { %p588_p1 = pnand %p586_p9, %p542_p3  ;;  %p594_p11 = scmp.lt.s32.totalorder %s592_s16, %s585_s25 }
  0x46   : > { %p589_p6 = pneg %p588_p1  ;;  %p595_p2 = por %p594_p11, %p593_p8 }
  0x48   : > { %p596_p5 = pnand %p595_p2, %p589_p6 }
  0x4a   : > { %599 = shalt.err (!%p596_p5)
}
  0x4b   : > { %470 = dma.hbm_to_vmem [thread:$0]  (!%p789_p0), %s834_s19, 128, %s183_s26, %s170_s30  }
  0x4c   : > { %p947_p13 = scmp.ne.s32.totalorder %s946_s15, 0 }
  0x4d   : > { %s859_s18 = sand.u32 (!%p947_p13), 1, %s670_s10   ;;  %p948_p3 = scmp.ne.s32.totalorder (!%p947_p13), %s941_s21, 0 }
  0x4e   : > { %191 = sbr.rel (%p947_p13) target bundleno = 147 (0x93), region = 28  ;;  %s442_s20 = sshll.u32 (!%p947_p13), %s859_s18, 5 }
  0x4f   : > { %s194_s4 = scalar_lea.sflag (!%p947_p13), [#allocation3], %s859_s18  ;;  %s197_s6 = scalar_lea.vmem (!%p947_p13), [#allocation2], %s442_s20 }
  0x55   : > { %653 = dma.done.wait (%p948_p3), %s194_s4, 512  }
  0x56   : > { %655 = vsyncadd (%p948_p3), %s194_s4, 4294966784  ;;  %s443_s5 = sshll.u32 %s859_s18, 3  ;;  %s203_s15 = scalar_lea.sflag [#allocation6], %s859_s18 }
  0x57   : > { %s206_s19 = scalar_lea.vmem [#allocation5], %s443_s5 }
  0x58   : > { %657 = dma.done.wait (%p948_p3), %s203_s15, 128  }
  0x59   : > { %659 = vsyncadd (%p948_p3), %s203_s15, 4294967168  ;;  %s456_s26 = smul.u32 24, %s859_s18  ;;  %v242_v0 = vld [vmem:[%s206_s19] sm:$0xff]  ;;  %v445_v4 = vld [vmem:[%s197_s6 + $0x10] sm:$0xff]  ;;  %v692_v6 = vmov 0.0   ;;  %s302_s25 = scalar_lea.sflag [#allocation4], %s859_s18 }
  0x5a   : > { %v243_v1 = vld [vmem:[%s197_s6] sm:$0xff]  ;;  %v444_v2 = vld [vmem:[%s197_s6 + $0x8] sm:$0xff]  ;;  %vm282_vm0 = vcmp.ge.s32.totalorder %v242_v0, 1  ;;  %vm283_vm1 = vcmp.lt.s32.totalorder %v242_v0, 4  ;;  %v446_v5 = vld [vmem:[%s197_s6 + $0x18] sm:$0xff]  ;;  %vm260_vm3 = vcmp.eq.s32.totalorder %v242_v0, 1 }
  0x5b   : > { %v246_v3 = vmax.f32 %v243_v1, %v444_v2  ;;  %vm284_vm2 = vmand %vm282_vm0, %vm283_vm1  ;;  %s874_s30 = scalar_lea.vmem [#allocation7], %s456_s26  ;;  %vm267_vm4 = vcmp.eq.s32.totalorder %v242_v0, 2  ;;  %vm274_vm5 = vcmp.eq.s32.totalorder %v242_v0, 3  ;;  %s457_s21 = smul.u32 384, %s678_s12 }
  0x5c   : > { %v447_v7 = vsel %vm284_vm2, 1.0, %v692_v6  ;;  %s317_s27 = sshll.u32 %s874_s30, 4  ;;  %p949_p0 = scmp.ne.s32.totalorder %s942_s22, 0  ;;  %s884_s27 = int_to_ptr.vmem [resolvable:$true] %s317_s27 }
  0x5d   : > { %v249_v8 = vmax.f32 %v246_v3, %v445_v4  ;;  %451 = vst [vmem:[%s874_s30 + $0x10] sm:$0xff] %v447_v7  ;;  %s882_s3 = scalar_lea.hbm %s937_s2, %s457_s21  ;;  %s600_s7 = scalar_lea.vmem %s884_s27, 384 }
  0x5e   : > { %p601_p8 = scmp.ne.s32.totalorder %s884_s27, %s600_s7  ;;  %s693_s12 = smov [#allocation7]  }
  0x5f   : > { %v252_v9 = vmax.f32 %v249_v8, %v446_v5  ;;  %s604_s8 = sshll.u32 %s693_s12, 4  ;;  %s605_s8 = int_to_ptr.vmem [resolvable:$false] %s604_s8 }
  0x60   : > { %p602_p11 = pnand %p601_p8, %p949_p0  ;;  %s606_s16 = scalar_lea.vmem %s605_s8, 768 }
  0x61   : > { %v253_v10 = vsub.f32 %v243_v1, %v252_v9  ;;  %v256_v11 = vsub.f32 %v444_v2, %v252_v9  ;;  %v263_v12 = vsub.f32 %v445_v4, %v252_v9  ;;  %v270_v13 = vsub.f32 %v446_v5, %v252_v9  ;;  %p607_p7 = scmp.lt.s32.totalorder %s884_s27, %s605_s8  ;;  %p608_p10 = scmp.lt.s32.totalorder %s606_s16, %s600_s7 }
  0x62   : > { %p603_p4 = pneg %p602_p11 }
  0x63   : > { %v254_v14 = vmul.f32 1.442695, %v253_v10  ;;  %v257_v15 = vmul.f32 1.442695, %v256_v11  ;;  %v264_v16 = vmul.f32 1.442695, %v263_v12  ;;  %p609_p12 = por %p608_p10, %p607_p7 }
  0x64   : > { %v271_v17 = vmul.f32 1.442695, %v270_v13 }
  0x65   : > { %530 = vpow2.f32 %v254_v14  ;;  %p610_p9 = pnand %p609_p12, %p603_p4 }
  0x66   : > { %532 = vpow2.f32 %v257_v15 }
  0x67   : > { %534 = vpow2.f32 %v264_v16 }
  0x68   : > { %536 = vpow2.f32 %v271_v17 }
  0x6f   : > { %v531_v18 = vpop.eup %530 }
  0x70   : > { %v533_v19 = vpop.eup %532 }
  0x71   : > { %v535_v20 = vpop.eup %534  ;;  %v259_v21 = vadd.f32 %v533_v19, %v531_v18  ;;  %v261_v25 = vsel %vm260_vm3, %v533_v19, 0.0 }
  0x72   : > { %v537_v22 = vpop.eup %536  ;;  %v268_v26 = vsel %vm267_vm4, %v535_v20, 0.0 }
  0x73   : > { %v266_v23 = vadd.f32 %v535_v20, %v259_v21  ;;  %v269_v27 = vadd.f32 %v268_v26, %v261_v25  ;;  %v275_v28 = vsel %vm274_vm5, %v537_v22, 0.0 }
  0x75   : > { %v273_v24 = vadd.f32 %v537_v22, %v266_v23  ;;  %v276_v29 = vadd.f32 %v275_v28, %v269_v27 }
  0x77   : > { %538 = vrcp.f32 %v273_v24  ;;  %v280_v30 = vsub.f32 %v273_v24, %v531_v18 }
  0x81   : > { %v539_v31 = vpop.eup %538 }
  0x82   : > { %v279_v32 = vmul.f32 %v539_v31, %v276_v29  ;;  %v281_v33 = vmul.f32 %v539_v31, %v280_v30 }
  0x84   : > { %290 = vst [vmem:[%s874_s30] sm:$0xff] %v279_v32  ;;  %449 = vst [vmem:[%s874_s30 + $0x8] sm:$0xff] %v281_v33 }
  0x85   : > { %613 = shalt.err (!%p610_p9)
}
  0x86   : > { %s614_s20 = scalar_lea.hbm %s882_s3, 384  ;;  %s618_s5 = scalar_lea.hbm %s937_s2, 768 }
  0x87   : > { %p615_p1 = scmp.ne.s32.totalorder %s882_s3, %s614_s20  ;;  %p619_p5 = scmp.lt.u32.totalorder %s882_s3, %s937_s2 }
  0x88   : > { %p620_p13 = scmp.lt.u32.totalorder %s618_s5, %s614_s20  ;;  %p622_p8 = scmp.lt.u32.totalorder %s614_s20, %s882_s3 }
  0x89   : > { %p616_p6 = pnand %p615_p1, %p949_p0 }
  0x8a   : > { %p621_p3 = por %p620_p13, %p619_p5 }
  0x8b   : > { %p617_p2 = pneg %p616_p6 }
  0x8c   : > { %p623_p11 = por %p622_p8, %p621_p3 }
  0x8e   : > { %p624_p4 = pnand %p623_p11, %p617_p2 }
  0x90   : > { %627 = shalt.err (!%p624_p4)
}
  0x91   : > { %s694_s26 = smov 128   ;;  %s695_s30 = smov 8  }
  0x92   : > { %462 = dma.vmem_to_hbm [thread:$0]  (%p949_p0), %s884_s27, 384, %s882_s3, %s302_s25, %s694_s26, %s694_s26, %s695_s30  }
  0x93 PF: > { %s332_s21 = sand.u32 1, %s666_s9   ;;  %p950_p7 = scmp.ne.s32.totalorder %s943_s24, 0 }
  0x94   : > { %p951_p10 = scmp.ge.s32.totalorder %s686_s14, 2  ;;  %s333_s28 = scalar_lea.sflag [#allocation4], %s332_s21 }
  0x96   : > { %p472_p12 = pnand %p951_p10, %p950_p7 }
  0x98   : > { %661 = dma.done.wait (!%p472_p12), %s333_s28, 384  }
  0x99   : > { %663 = vsyncadd (!%p472_p12), %s333_s28, 4294966912  ;;  %s21_s14 = sadd.s32 1, %s686_s14   ;;  %s952_s9 = smov %s670_s10 }
  0x9a   : > { %p18_p9 = scmp.ge.s32.totalorder %s21_s14, 4   ;;  %s953_s10 = smov %s674_s11 }
  0x9b   : > { %s954_s11 = smov %s767_s23  ;;  %s955_s12 = smov %s682_s13 }
  0x9c   : > { %s956_s13 = smov %s958_s17  ;;  %20 = sbr.rel (!%p18_p9) target bundleno = 8 (0x8), region = 95 }
  0xa3   :  { %338 = vsyncpa [#allocation3], 1 }
  0xa4   :  { %340 = vsyncpa [#allocation3 + $0x1], 1 }
  0xa5   :  { %341 = vsyncpa [#allocation6], 1 }
  0xa6   :  { %343 = vsyncpa [#allocation6 + $0x1], 1 }
  0xa7   :  { %344 = vsyncpa [#allocation4], 1 }
  0xa8   :  { %346 = vsyncpa [#allocation4 + $0x1], 1 }

</bundles_post_ra>
